<compile_context>
chip_gen: v5e
topology: v5e:2x2
jax: 0.10.0
libtpu: 0.0.40
codegen_flags: <defaults>
</compile_context>

<pallas_src>
import jax
import jax.numpy as jnp
from jax.experimental import pallas as pl
from jax.experimental.pallas import tpu as pltpu

_LANES = 128


def _sublanes_for(dtype):
    itemsize = jnp.dtype(dtype).itemsize
    return {4: 8, 2: 16, 1: 32}.get(itemsize, 8)


def _device_defaults():
    """(tile_rows, n_splits) tuned per TPU generation."""
    try:
        kind = jax.devices()[0].device_kind.lower()
    except Exception:
        kind = ""
    if "v7" in kind or "7x" in kind:
        return 4096, 2          # 2 TCs/chip, 3.2 TB/s: big tiles + core split
    if "v6" in kind:
        return 2048, 1
    return 1024, 1              # v5e & safe fallback


def _ssq_all_tasks_kernel(pred_ref, true_ref, ssq_ref):
    """Single grid step: all tasks at once.

    pred_ref / true_ref : VMEM (n_tasks, rows, 128)  native dtype
    ssq_ref             : VMEM (n_tasks, 1)          float32
    """
    diff = pred_ref[...].astype(jnp.float32) - true_ref[...].astype(jnp.float32)
    d2 = diff * diff
    # Reduce lanes, then rows, per task (wrapper zero-padding contributes 0).
    ssq_ref[...] = jnp.sum(jnp.sum(d2, axis=2), axis=1, keepdims=True)


def _make_tiled_kernel(tile_rows, tiles_per_split, num_row_tiles,
                       valid_rows_last, ragged):
    """Grid = (task [parallel], core-split [parallel], row-tile [arbitrary])."""
    groups = tile_rows // 8

    def kernel(pred_ref, true_ref, ssq_ref, acc_ref):
        ri = pl.program_id(2)

        @pl.when(ri == 0)
        def _():
            acc_ref[...] = jnp.zeros_like(acc_ref)

        diff = pred_ref[...].astype(jnp.float32) - true_ref[...].astype(jnp.float32)
        d2 = diff * diff

        if ragged:
            # The final edge block carries unspecified padding rows: mask them.
            ci = pl.program_id(1)
            is_last_global = (ci * tiles_per_split + ri) == (num_row_tiles - 1)
            row_idx = jax.lax.broadcasted_iota(jnp.int32, d2.shape, 1)
            keep = jnp.logical_or(jnp.logical_not(is_last_global),
                                  row_idx < valid_rows_last)
            d2 = jnp.where(keep, d2, 0.0)

        # Per-vreg partial sums into the resident (8,128) accumulator.
        acc_ref[...] += jnp.sum(d2.reshape(groups, 8, _LANES), axis=0)

        @pl.when(ri == tiles_per_split - 1)
        def _():
            ssq_ref[0] = jnp.sum(acc_ref[...])

    return kernel


def _to_lane_rows(x, rows):
    """(n_tasks, B, F) -> lane-dense (n_tasks, rows, 128); pads only the tiny
    tail up to the (sublane x 128) boundary (no pad at all when aligned)."""
    n_tasks = x.shape[0]
    flat = x.reshape(n_tasks, -1)
    pad = rows * _LANES - flat.shape[1]
    if pad:
        flat = jnp.pad(flat, ((0, 0), (0, pad)))
    return flat.reshape(n_tasks, rows, _LANES)


def multi_task_homoscedastic_loss(preds, trues, loss_weights, *,
                                  tile_rows=None, n_splits=None):
    """preds, trues: (n_tasks, B, F); loss_weights: (n_tasks,).

    Returns (total_loss: (1,), per_task_losses: (n_tasks,)).
    """
    n_tasks, B, F = preds.shape
    assert trues.shape == preds.shape
    assert loss_weights.shape == (n_tasks,)

    n_elems = B * F
    sub = _sublanes_for(preds.dtype)
    d_tile, d_splits = _device_defaults()
    if tile_rows is None:
        tile_rows = d_tile
    if n_splits is None:
        n_splits = d_splits
    tile_rows = max(sub, (tile_rows // sub) * sub)

    # Minimal lane-dense layout (native dtype, no wrapper upcast).
    rows = -(-n_elems // (sub * _LANES)) * sub
    p = _to_lane_rows(preds, rows)
    t = _to_lane_rows(trues, rows)

    itemsize = jnp.dtype(preds.dtype).itemsize
    total_bytes = 2 * n_tasks * rows * _LANES * itemsize
    single_shot = rows <= tile_rows and total_bytes <= (2 << 20)

    if single_shot:
        ssq = pl.pallas_call(
            _ssq_all_tasks_kernel,
            out_shape=jax.ShapeDtypeStruct((n_tasks, 1), jnp.float32),
            in_specs=[
                pl.BlockSpec(memory_space=pltpu.VMEM),
                pl.BlockSpec(memory_space=pltpu.VMEM),
            ],
            out_specs=pl.BlockSpec(memory_space=pltpu.VMEM),
        )(p, t)[:, 0]
    else:
        # Clamp the row tile to the actual data extent.
        tile_rows = min(tile_rows, rows)
        num_row_tiles = -(-rows // tile_rows)
        if n_splits < 1 or num_row_tiles % n_splits != 0:
            n_splits = 1
        tiles_per_split = num_row_tiles // n_splits
        valid_rows_last = rows - (num_row_tiles - 1) * tile_rows
        ragged = (rows % tile_rows) != 0

        kernel = _make_tiled_kernel(tile_rows, tiles_per_split, num_row_tiles,
                                    valid_rows_last, ragged)
        partials = pl.pallas_call(
            kernel,
            out_shape=jax.ShapeDtypeStruct((n_tasks * n_splits,), jnp.float32),
            grid=(n_tasks, n_splits, tiles_per_split),
            in_specs=[
                pl.BlockSpec((1, tile_rows, _LANES),
                             lambda ti, ci, ri: (ti, ci * tiles_per_split + ri, 0)),
                pl.BlockSpec((1, tile_rows, _LANES),
                             lambda ti, ci, ri: (ti, ci * tiles_per_split + ri, 0)),
            ],
            out_specs=pl.BlockSpec((1,), lambda ti, ci, ri: (ti * n_splits + ci,),
                                   memory_space=pltpu.SMEM),
            scratch_shapes=[pltpu.VMEM((8, _LANES), jnp.float32)],
            compiler_params=pltpu.CompilerParams(
                dimension_semantics=("parallel", "parallel", "arbitrary"),
            ),
        )(p, t)
        ssq = jnp.sum(partials.reshape(n_tasks, n_splits), axis=1)

    # Scalar epilogue (n_tasks values).  Divisor is the REAL element count.
    mse = ssq / jnp.float32(n_elems)
    w = loss_weights.astype(jnp.float32)
    w2 = w * w
    per_task = mse / (2.0 * w2) + jnp.log(w2)
    total = jnp.sum(per_task, keepdims=True)  # shape (1,), like torch.zeros(1)
    return total, per_task


def _reference(preds, trues, loss_weights):
    diff = preds.astype(jnp.float32) - trues.astype(jnp.float32)
    mse = jnp.mean(diff * diff, axis=(1, 2))
    w = loss_weights.astype(jnp.float32)
    w2 = w * w
    per_task = mse / (2.0 * w2) + jnp.log(w2)
    return jnp.sum(per_task, keepdims=True), per_task


if __name__ == "__main__":
    key = jax.random.PRNGKey(0)

    # --- Test 1: small, unaligned (n_elems % 128 != 0) -> single-shot path --
    n_tasks, B, F = 3, 4, 16
    k1, k2, k3, key = jax.random.split(key, 4)
    preds = jax.random.normal(k1, (n_tasks, B, F), dtype=jnp.float32)
    trues = jax.random.normal(k2, (n_tasks, B, F), dtype=jnp.float32)
    # prior='uniform' -> weights ~ U(0, 1); keep away from 0 for numerical sanity.
    loss_weights = jax.random.uniform(
        k3, (n_tasks,), dtype=jnp.float32, minval=0.1, maxval=1.0
    )
    total, per_task = multi_task_homoscedastic_loss(preds, trues, loss_weights)
    jax.block_until_ready((total, per_task))
    ref_total, ref_per_task = _reference(preds, trues, loss_weights)
    assert jnp.allclose(total, ref_total, rtol=1e-5, atol=1e-5), (total, ref_total)
    assert jnp.allclose(per_task, ref_per_task, rtol=1e-5, atol=1e-5)

    # --- Test 2: tiled path with a ragged final row tile (in-kernel mask) ---
    n_tasks2, B2, F2 = 2, 16, 640          # rows=80, tile_rows=32 -> 3 tiles, ragged
    k4, k5, k6, key = jax.random.split(key, 4)
    preds2 = jax.random.normal(k4, (n_tasks2, B2, F2), dtype=jnp.float32)
    trues2 = jax.random.normal(k5, (n_tasks2, B2, F2), dtype=jnp.float32)
    weights2 = jax.random.uniform(
        k6, (n_tasks2,), dtype=jnp.float32, minval=0.1, maxval=1.0
    )
    total2, per_task2 = multi_task_homoscedastic_loss(
        preds2, trues2, weights2, tile_rows=32
    )
    jax.block_until_ready((total2, per_task2))
    ref_total2, ref_per_task2 = _reference(preds2, trues2, weights2)
    assert jnp.allclose(total2, ref_total2, rtol=1e-4, atol=1e-5), (total2, ref_total2)
    assert jnp.allclose(per_task2, ref_per_task2, rtol=1e-4, atol=1e-5)

    # --- Test 3: tiled path with explicit 2-way split (partials combine) ----
    n_tasks3, B3, F3 = 1, 64, 256          # rows=128, tile_rows=32 -> 4 tiles, 2 splits
    k7, k8, k9, key = jax.random.split(key, 4)
    preds3 = jax.random.normal(k7, (n_tasks3, B3, F3), dtype=jnp.float32)
    trues3 = jax.random.normal(k8, (n_tasks3, B3, F3), dtype=jnp.float32)
    weights3 = jax.random.uniform(
        k9, (n_tasks3,), dtype=jnp.float32, minval=0.1, maxval=1.0
    )
    total3, per_task3 = multi_task_homoscedastic_loss(
        preds3, trues3, weights3, tile_rows=32, n_splits=2
    )
    jax.block_until_ready((total3, per_task3))
    ref_total3, ref_per_task3 = _reference(preds3, trues3, weights3)
    assert jnp.allclose(total3, ref_total3, rtol=1e-4, atol=1e-5), (total3, ref_total3)
    assert jnp.allclose(per_task3, ref_per_task3, rtol=1e-4, atol=1e-5)

    # --- Test 4: bf16 inputs stay bf16 in HBM; cast to f32 inside kernel ----
    n_tasks4, B4, F4 = 2, 8, 256
    k10, k11, k12, key = jax.random.split(key, 4)
    preds4 = jax.random.normal(k10, (n_tasks4, B4, F4), dtype=jnp.bfloat16)
    trues4 = jax.random.normal(k11, (n_tasks4, B4, F4), dtype=jnp.bfloat16)
    weights4 = jax.random.uniform(
        k12, (n_tasks4,), dtype=jnp.float32, minval=0.1, maxval=1.0
    )
    total4, per_task4 = multi_task_homoscedastic_loss(preds4, trues4, weights4)
    jax.block_until_ready((total4, per_task4))
    ref_total4, ref_per_task4 = _reference(preds4, trues4, weights4)
    assert jnp.allclose(total4, ref_total4, rtol=1e-3, atol=1e-4), (total4, ref_total4)
    assert jnp.allclose(per_task4, ref_per_task4, rtol=1e-3, atol=1e-4)

    print("KERNEL_OK")
</pallas_src>

<mosaic_0001>
module attributes {stable_mosaic.version = 11 : i64} {
  func.func @_ssq_all_tasks_kernel(%arg0: memref<3x8x128xf32, #tpu.memory_space<vmem>>, %arg1: memref<3x8x128xf32, #tpu.memory_space<vmem>>, %arg2: memref<3x1xf32, #tpu.memory_space<vmem>>) attributes {dimension_semantics = [], scalar_prefetch = 0 : i64, scratch_operands = 0 : i64, tpu.core_type = #tpu.core_type<tc>} {
    %c0 = arith.constant 0 : index
    %c0_0 = arith.constant 0 : index
    %c0_1 = arith.constant 0 : index
    %0 = vector.load %arg0[%c0, %c0_0, %c0_1] : memref<3x8x128xf32, #tpu.memory_space<vmem>>, vector<3x8x128xf32>
    %c0_2 = arith.constant 0 : index
    %c0_3 = arith.constant 0 : index
    %c0_4 = arith.constant 0 : index
    %1 = vector.load %arg1[%c0_2, %c0_3, %c0_4] : memref<3x8x128xf32, #tpu.memory_space<vmem>>, vector<3x8x128xf32>
    %2 = arith.subf %0, %1 : vector<3x8x128xf32>
    %3 = arith.mulf %2, %2 : vector<3x8x128xf32>
    %cst = arith.constant dense<0.000000e+00> : vector<3x8xf32>
    %4 = vector.multi_reduction <add>, %3, %cst [2] : vector<3x8x128xf32> to vector<3x8xf32>
    %cst_5 = arith.constant dense<0.000000e+00> : vector<3xf32>
    %5 = vector.multi_reduction <add>, %4, %cst_5 [1] : vector<3x8xf32> to vector<3xf32>
    %6 = vector.shape_cast %5 : vector<3xf32> to vector<3x1xf32>
    %c0_6 = arith.constant 0 : index
    %c0_7 = arith.constant 0 : index
    %7 = vector.load %arg2[%c0_6, %c0_7] : memref<3x1xf32, #tpu.memory_space<vmem>>, vector<3x1xf32>
    tpu.vector_store %arg2[%c0_6, %c0_7], %6 {strides = array<i32>} : memref<3x1xf32, #tpu.memory_space<vmem>>, vector<3x1xf32>,
    return
  }
}

</mosaic_0001>

<bundles_post_ra>
// kernel: tpu_custom_call.1
= control target key start
LH: loop header
LB: loop body
LE: loop exit
PB: predicated region body
PF: predicated region fallthrough
CT: control target
= control target key end

     0   :  { %7 = vsyncpa [#allocation3], 0  ;;  %s170_s0 = inlined_call_operand.hbm [shape: f32[3,8,128], index: 0, kind: input, shape index: {}]   ;;  %s171_s1 = inlined_call_operand.hbm [shape: f32[3,8,128], index: 1, kind: input, shape index: {}]   ;;  %s172_s2 = inlined_call_operand.vmem [shape: f32[3,1], index: 2, kind: output, shape index: {}]  }
   0x1   :  { %s13_s11 = sshll.u32 %s170_s0, 4  ;;  %s14_s11 = int_to_ptr.hbm [resolvable:$true] %s13_s11 }
   0x2   :  { %8 = vsyncpa [#allocation5], 0  ;;  %s142_s12 = smov [#allocation2]   ;;  %s26_s16 = sshll.u32 %s171_s1, 4  ;;  %s27_s16 = int_to_ptr.hbm [resolvable:$true] %s26_s16 }
   0x3   :  { %s15_s13 = sshll.u32 %s142_s12, 4  ;;  %s143_s17 = smov 128   ;;  %s16_s13 = int_to_ptr.vmem [resolvable:$true] %s15_s13 }
   0x4   :  { %s144_s18 = smov 8   ;;  %s145_s19 = smov [#allocation4]  }
   0x5   :  { %21 = dma.hbm_to_vmem [thread:$0]  %s14_s11, 384, %s16_s13, [#allocation3], %s143_s17, %s143_s17, %s144_s18  }
   0x6   :  { %s28_s20 = sshll.u32 %s145_s19, 4  ;;  %s29_s20 = int_to_ptr.vmem [resolvable:$true] %s28_s20 }
   0x7   :  { %34 = dma.hbm_to_vmem [thread:$0]  %s27_s16, 384, %s29_s20, [#allocation5], %s143_s17, %s143_s17, %s144_s18  }
   0x8   :  { %138 = dma.done.wait [#allocation3], 384  }
   0x9   :  { %139 = vsyncadd [#allocation3], 4294966912 }
   0xa   :  { %140 = dma.done.wait [#allocation5], 384  }
   0xb   :  { %141 = vsyncadd [#allocation5], 4294966912  ;;  %v43_v0 = vld [vmem:[#allocation2] sm:$0xff]  ;;  %v46_v1 = vld [vmem:[#allocation4] sm:$0xff]  ;;  %v64_v13 = vlaneseq  ;;  %vm69_vm0 = vcmask 1041409   ;;  %vm71_vm1 = vcmask 1042434  }
   0xc   :  { %v49_v2 = vsub.f32 %v43_v0, %v46_v1  ;;  %v45_v3 = vld [vmem:[#allocation2 + $0x10] sm:$0xff]  ;;  %v48_v4 = vld [vmem:[#allocation4 + $0x10] sm:$0xff]  ;;  %v47_v6 = vld [vmem:[#allocation4 + $0x8] sm:$0xff]  ;;  %vm74_vm2 = vcmask 59392   ;;  %vm78_vm3 = vcmask 2048  }
   0xd   :  { %v44_v5 = vld [vmem:[#allocation2 + $0x8] sm:$0xff]  ;;  %v51_v7 = vsub.f32 %v45_v3, %v48_v4  ;;  %v65_v14 = vand.u32 127, %v64_v13 }
   0xe   :  { %v52_v8 = vmul.f32 %v49_v2, %v49_v2  ;;  %v50_v10 = vsub.f32 %v44_v5, %v47_v6 }
   0xf   :  { %v54_v9 = vmul.f32 %v51_v7, %v51_v7 }
  0x10   :  { %55 = vadd.xlane.f32.xlu0 %v52_v8  ;;  %v53_v11 = vmul.f32 %v50_v10, %v50_v10 }
  0x11   :  { %59 = vadd.xlane.f32.xlu1 %v54_v9 }
  0x18   :  { %57 = vadd.xlane.f32.xlu0 %v53_v11 }
  0x83   :  { %v56_v12 = vpop.xlane.xlu0 %55 }
  0x84   :  { %v60_v15 = vpop.xlane.xlu1 %59  ;;  %v66_v18 = vperm.slane %v56_v12, %v65_v14 }
  0x85   :  { %v68_v17 = vperm.slane %v60_v15, %v65_v14 }
  0x8b   :  { %v58_v16 = vpop.xlane.xlu0 %57 }
  0x8c   :  { %v67_v19 = vperm.slane %v58_v16, %v65_v14 }
  0x8e   :  { %v70_v20 = vsel %vm69_vm0, %v67_v19, %v66_v18 }
  0x8f   :  { %v72_v21 = vsel %vm71_vm1, %v68_v17, %v70_v20 }
  0x90   :  { %v75_v22 = vsel %vm74_vm2, %v72_v21, 0.0 }
  0x91   :  { %76 = vadd.xlane.f32.xlu1 %v75_v22 }
 0x104   :  { %v77_v23 = vpop.xlane.xlu1 %76 }
 0x105   :  { %79 = vst.msk [vmem:[%s172_s2] sm:$0x7] %vm78_vm3, %v77_v23 }
 0x106   :  { %84 = vsyncpa [#allocation3], 1 }
 0x107   :  { %85 = vsyncpa [#allocation5], 1 }

</bundles_post_ra>
